<compile_context>
chip_gen: v6e
topology: v6e:2x2x1
jax: 0.10.0
libtpu: 0.0.40
codegen_flags: <defaults>
</compile_context>

<pallas_src>
import functools

import jax
import jax.numpy as jnp
from jax.experimental import pallas as pl
from jax.experimental.pallas import tpu as pltpu


STEM_C = 32          # EfficientNet-b0 stem width
HEAD_C = 128         # reduced head width (b0 uses 1280)
FEAT_DIM = 1000      # EfficientNet.from_pretrained final fc output
NUM_CLASSES = (3, 2, 7)
N_HEADS_OUT = sum(NUM_CLASSES)   # 12
N_PAD = 128                      # lane-dense padded classifier output


# ----------------------------------------------------------------------------
# Fused Pallas kernel: whole forward for one batch image
# ----------------------------------------------------------------------------

def _fused_effnet_kernel(x_ref, sw_ref, sb_ref, hw_ref, hb_ref, fw_ref, fb_ref,
                         o_ref, *, oh, ow):
    """x_ref: (1, 2, 2, Hp/2, Wp/2, 3) stride-2 phase-split padded image.

    Everything below stays resident in vregs/VMEM; the only HBM store is the
    lane-dense (1, 8, 128) logits slab.
    """
    m = oh * ow

    # --- stem: 3x3 stride-2 conv, decomposed into 9 (m,3)@(3,32) MXU dots ---
    # Patch for kernel offset (ki,kj) is a plain static slice of the phase
    # tensor: no strided loads, no im2col expansion in HBM.
    acc = jnp.zeros((m, STEM_C), jnp.float32)
    for ki in range(3):
        for kj in range(3):
            patch = x_ref[0, ki % 2, kj % 2,
                          ki // 2:ki // 2 + oh,
                          kj // 2:kj // 2 + ow, :]          # (oh, ow, 3)
            p = patch.reshape(m, 3).astype(jnp.bfloat16)
            acc = acc + jnp.dot(p, sw_ref[ki * 3 + kj],
                                preferred_element_type=jnp.float32)
    h = acc + sb_ref[...]                                    # (m, 32), f32
    h = h * jax.nn.sigmoid(h)                                # swish (f32 epilogue)

    # --- head 1x1 conv (32 -> 128) + swish ---
    h2 = jnp.dot(h.astype(jnp.bfloat16), hw_ref[...],
                 preferred_element_type=jnp.float32) + hb_ref[...]
    h2 = h2 * jax.nn.sigmoid(h2)                             # (m, 128), f32

    # --- global average pool (AdaptiveAvgPool2d((1,1))) fused in-epilogue ---
    pooled = jnp.mean(h2, axis=0, keepdims=True)             # (1, 128)
    # Sublane-broadcast to 8 rows so the final dot / store are full (8,128)
    # tiles (no masked vst); all 8 rows are identical.
    pooled8 = jnp.broadcast_to(pooled, (8, HEAD_C))

    # --- folded fc(128->1000) + 3 classifier heads (1000->12), padded to 128 ---
    logits = jnp.dot(pooled8.astype(jnp.bfloat16), fw_ref[...],
                     preferred_element_type=jnp.float32) + fb_ref[...]
    o_ref[...] = logits.reshape(1, 8, N_PAD)


# ----------------------------------------------------------------------------
# Parameters
# ----------------------------------------------------------------------------

def init_params(key):
    """PyTorch-layout-ish deterministic init of the stand-in backbone + heads."""
    ks = jax.random.split(key, 12)

    def dense(k, fan_in, shape):
        return (jax.random.normal(k, shape, jnp.float32)
                / jnp.sqrt(jnp.float32(fan_in)))

    p = {}
    p["stem_w"] = dense(ks[0], 3 * 3 * 3, (3, 3, 3, STEM_C))   # (kh, kw, cin, cout)
    p["stem_b"] = jax.random.normal(ks[1], (STEM_C,), jnp.float32) * 0.01
    p["head_w"] = dense(ks[2], STEM_C, (STEM_C, HEAD_C))
    p["head_b"] = jax.random.normal(ks[3], (HEAD_C,), jnp.float32) * 0.01
    p["fc_w"] = dense(ks[4], HEAD_C, (HEAD_C, FEAT_DIM))
    p["fc_b"] = jax.random.normal(ks[5], (FEAT_DIM,), jnp.float32) * 0.01
    p["cls1_w"] = dense(ks[6], FEAT_DIM, (FEAT_DIM, NUM_CLASSES[0]))
    p["cls1_b"] = jax.random.normal(ks[7], (NUM_CLASSES[0],), jnp.float32) * 0.01
    p["cls2_w"] = dense(ks[8], FEAT_DIM, (FEAT_DIM, NUM_CLASSES[1]))
    p["cls2_b"] = jax.random.normal(ks[9], (NUM_CLASSES[1],), jnp.float32) * 0.01
    p["cls3_w"] = dense(ks[10], FEAT_DIM, (FEAT_DIM, NUM_CLASSES[2]))
    p["cls3_b"] = jax.random.normal(ks[11], (NUM_CLASSES[2],), jnp.float32) * 0.01
    return p


def prepare_fused_params(p):
    """One-time fold / pad / bf16-cast of parameters into kernel-ready form."""
    stem_w = p["stem_w"].reshape(9, 3, STEM_C).astype(jnp.bfloat16)
    stem_b = p["stem_b"].reshape(1, STEM_C).astype(jnp.float32)
    head_w = p["head_w"].astype(jnp.bfloat16)
    head_b = p["head_b"].reshape(1, HEAD_C).astype(jnp.float32)

    # Fold fc (128->1000) and concatenated classifier heads (1000->12) into a
    # single affine map (exact: no activation between them), then pad the
    # output dim 12 -> 128 so the kernel output is lane-dense.
    w_cat = jnp.concatenate([p["cls1_w"], p["cls2_w"], p["cls3_w"]], axis=1)  # (1000, 12)
    b_cat = jnp.concatenate([p["cls1_b"], p["cls2_b"], p["cls3_b"]], axis=0)  # (12,)
    fold_w = p["fc_w"] @ w_cat                      # (128, 12), folded in f32
    fold_b = p["fc_b"] @ w_cat + b_cat              # (12,)
    fold_w = jnp.pad(fold_w, ((0, 0), (0, N_PAD - N_HEADS_OUT))).astype(jnp.bfloat16)
    fold_b = jnp.pad(fold_b, (0, N_PAD - N_HEADS_OUT)).reshape(1, N_PAD).astype(jnp.float32)

    return {"stem_w": stem_w, "stem_b": stem_b,
            "head_w": head_w, "head_b": head_b,
            "fold_w": fold_w, "fold_b": fold_b}


# ----------------------------------------------------------------------------
# Forward
# ----------------------------------------------------------------------------

def effnet_basic_forward(fparams, x_nchw):
    B, C, H, W = x_nchw.shape
    assert C == 3 and H % 2 == 0 and W % 2 == 0

    # NCHW -> NHWC (channels on the lane axis)
    x = jnp.transpose(x_nchw, (0, 2, 3, 1)).astype(jnp.float32)

    # Zero-pad (3x3/s2 "same"-style) and split into the 4 stride-2 phases.
    # Pure layout transform (same bytes as the input): the 9x patch expansion
    # happens only in vregs inside the kernel.
    xp = jnp.pad(x, ((0, 0), (1, 1), (1, 1), (0, 0)))            # (B, H+2, W+2, 3)
    Hp, Wp = H + 2, W + 2
    # xph[b, pr, pc, i, j, c] == xp[b, 2*i + pr, 2*j + pc, c]
    xph = xp.reshape(B, Hp // 2, 2, Wp // 2, 2, 3).transpose(0, 2, 4, 1, 3, 5)

    oh, ow = H // 2, W // 2
    kernel = functools.partial(_fused_effnet_kernel, oh=oh, ow=ow)

    out = pl.pallas_call(
        kernel,
        out_shape=jax.ShapeDtypeStruct((B, 8, N_PAD), jnp.float32),
        grid=(B,),
        in_specs=[
            pl.BlockSpec((1, 2, 2, Hp // 2, Wp // 2, 3),
                         lambda b: (b, 0, 0, 0, 0, 0)),
            pl.BlockSpec((9, 3, STEM_C), lambda b: (0, 0, 0)),
            pl.BlockSpec((1, STEM_C), lambda b: (0, 0)),
            pl.BlockSpec((STEM_C, HEAD_C), lambda b: (0, 0)),
            pl.BlockSpec((1, HEAD_C), lambda b: (0, 0)),
            pl.BlockSpec((HEAD_C, N_PAD), lambda b: (0, 0)),
            pl.BlockSpec((1, N_PAD), lambda b: (0, 0)),
        ],
        out_specs=pl.BlockSpec((1, 8, N_PAD), lambda b: (b, 0, 0)),
        compiler_params=pltpu.CompilerParams(
            dimension_semantics=("parallel",)),
    )(xph, fparams["stem_w"], fparams["stem_b"],
      fparams["head_w"], fparams["head_b"],
      fparams["fold_w"], fparams["fold_b"])

    # Row 0 of the broadcast slab holds the 12 real logits.
    logits = out[:, 0, :N_HEADS_OUT]
    n1, n2, _ = NUM_CLASSES
    x1 = logits[:, :n1]
    x2 = logits[:, n1:n1 + n2]
    x3 = logits[:, n1 + n2:]
    return x1, x2, x3


# ----------------------------------------------------------------------------
# Main
# ----------------------------------------------------------------------------

if __name__ == "__main__":
    key = jax.random.PRNGKey(0)
    k_params, k_x = jax.random.split(key)

    params = init_params(k_params)
    fused_params = prepare_fused_params(params)   # one-time fold/pad/cast

    # small NCHW input: batch=2, channels=3 (RGB), spatial=16
    x = jax.random.normal(k_x, (2, 3, 16, 16), jnp.float32)

    fwd = jax.jit(effnet_basic_forward)
    x1, x2, x3 = fwd(fused_params, x)
    jax.block_until_ready((x1, x2, x3))

    assert x1.shape == (2, 3)
    assert x2.shape == (2, 2)
    assert x3.shape == (2, 7)
    print("KERNEL_OK")
</pallas_src>

<mosaic_0001>
module attributes {stable_mosaic.version = 11 : i64} {
  func.func @_fused_effnet_kernel(%arg0: i32, %arg1: memref<1x2x2x9x9x3xf32, #tpu.memory_space<vmem>>, %arg2: memref<9x3x32xbf16, #tpu.memory_space<vmem>>, %arg3: memref<1x32xf32, #tpu.memory_space<vmem>>, %arg4: memref<32x128xbf16, #tpu.memory_space<vmem>>, %arg5: memref<1x128xf32, #tpu.memory_space<vmem>>, %arg6: memref<128x128xbf16, #tpu.memory_space<vmem>>, %arg7: memref<1x128xf32, #tpu.memory_space<vmem>>, %arg8: memref<1x8x128xf32, #tpu.memory_space<vmem>>) attributes {dimension_semantics = [#tpu.dimension_semantics<parallel>], iteration_bounds = array<i64: 2>, scalar_prefetch = 0 : i64, scratch_operands = 0 : i64, tpu.core_type = #tpu.core_type<tc>, window_params = [{transform_indices = @transform_0, window_bounds = array<i64: 1, 2, 2, 9, 9, 3>}, {pipeline_mode = #tpu.pipeline_mode<synchronous>, transform_indices = @transform_1, window_bounds = array<i64: 9, 3, 32>}, {pipeline_mode = #tpu.pipeline_mode<synchronous>, transform_indices = @transform_2, window_bounds = array<i64: 1, 32>}, {pipeline_mode = #tpu.pipeline_mode<synchronous>, transform_indices = @transform_3, window_bounds = array<i64: 32, 128>}, {pipeline_mode = #tpu.pipeline_mode<synchronous>, transform_indices = @transform_4, window_bounds = array<i64: 1, 128>}, {pipeline_mode = #tpu.pipeline_mode<synchronous>, transform_indices = @transform_5, window_bounds = array<i64: 128, 128>}, {pipeline_mode = #tpu.pipeline_mode<synchronous>, transform_indices = @transform_6, window_bounds = array<i64: 1, 128>}, {transform_indices = @transform_7, window_bounds = array<i64: 1, 8, 128>}]} {
    %cst = arith.constant 0.000000e+00 : f32
    %0 = vector.broadcast %cst : f32 to vector<64x32xf32>
    %c0 = arith.constant 0 : index
    %c0_0 = arith.constant 0 : index
    %c0_1 = arith.constant 0 : index
    %c0_2 = arith.constant 0 : index
    %c0_3 = arith.constant 0 : index
    %c0_4 = arith.constant 0 : index
    %1 = vector.load %arg1[%c0, %c0_0, %c0_1, %c0_2, %c0_3, %c0_4] : memref<1x2x2x9x9x3xf32, #tpu.memory_space<vmem>>, vector<1x1x1x8x8x3xf32>
    %2 = vector.shape_cast %1 : vector<1x1x1x8x8x3xf32> to vector<8x8x3xf32>
    %3 = vector.shape_cast %2 : vector<8x8x3xf32> to vector<64x3xf32>
    %4 = arith.truncf %3 : vector<64x3xf32> to vector<64x3xbf16>
    %c0_5 = arith.constant 0 : index
    %c0_6 = arith.constant 0 : index
    %c0_7 = arith.constant 0 : index
    %5 = vector.load %arg2[%c0_5, %c0_6, %c0_7] : memref<9x3x32xbf16, #tpu.memory_space<vmem>>, vector<1x3x32xbf16>
    %6 = vector.shape_cast %5 : vector<1x3x32xbf16> to vector<3x32xbf16>
    %cst_8 = arith.constant dense<0.000000e+00> : vector<64x32xf32>
    %7 = tpu.matmul %4, %6, %cst_8 {dimension_numbers = #tpu.dot_dimension_numbers<[1], [0], [0], [1], [0, 0, 1, 1], [], []>} : vector<64x3xbf16>, vector<3x32xbf16>, vector<64x32xf32> -> vector<64x32xf32>
    %8 = arith.addf %0, %7 : vector<64x32xf32>
    %c0_9 = arith.constant 0 : index
    %c0_10 = arith.constant 0 : index
    %c1 = arith.constant 1 : index
    %c0_11 = arith.constant 0 : index
    %c0_12 = arith.constant 0 : index
    %c0_13 = arith.constant 0 : index
    %9 = vector.load %arg1[%c0_9, %c0_10, %c1, %c0_11, %c0_12, %c0_13] : memref<1x2x2x9x9x3xf32, #tpu.memory_space<vmem>>, vector<1x1x1x8x8x3xf32>
    %10 = vector.shape_cast %9 : vector<1x1x1x8x8x3xf32> to vector<8x8x3xf32>
    %11 = vector.shape_cast %10 : vector<8x8x3xf32> to vector<64x3xf32>
    %12 = arith.truncf %11 : vector<64x3xf32> to vector<64x3xbf16>
    %c1_14 = arith.constant 1 : index
    %c0_15 = arith.constant 0 : index
    %c0_16 = arith.constant 0 : index
    %13 = vector.load %arg2[%c1_14, %c0_15, %c0_16] : memref<9x3x32xbf16, #tpu.memory_space<vmem>>, vector<1x3x32xbf16>
    %14 = vector.shape_cast %13 : vector<1x3x32xbf16> to vector<3x32xbf16>
    %cst_17 = arith.constant dense<0.000000e+00> : vector<64x32xf32>
    %15 = tpu.matmul %12, %14, %cst_17 {dimension_numbers = #tpu.dot_dimension_numbers<[1], [0], [0], [1], [0, 0, 1, 1], [], []>} : vector<64x3xbf16>, vector<3x32xbf16>, vector<64x32xf32> -> vector<64x32xf32>
    %16 = arith.addf %8, %15 : vector<64x32xf32>
    %c0_18 = arith.constant 0 : index
    %c0_19 = arith.constant 0 : index
    %c0_20 = arith.constant 0 : index
    %c0_21 = arith.constant 0 : index
    %c1_22 = arith.constant 1 : index
    %c0_23 = arith.constant 0 : index
    %17 = vector.load %arg1[%c0_18, %c0_19, %c0_20, %c0_21, %c1_22, %c0_23] : memref<1x2x2x9x9x3xf32, #tpu.memory_space<vmem>>, vector<1x1x1x8x8x3xf32>
    %18 = vector.shape_cast %17 : vector<1x1x1x8x8x3xf32> to vector<8x8x3xf32>
    %19 = vector.shape_cast %18 : vector<8x8x3xf32> to vector<64x3xf32>
    %20 = arith.truncf %19 : vector<64x3xf32> to vector<64x3xbf16>
    %c2 = arith.constant 2 : index
    %c0_24 = arith.constant 0 : index
    %c0_25 = arith.constant 0 : index
    %21 = vector.load %arg2[%c2, %c0_24, %c0_25] : memref<9x3x32xbf16, #tpu.memory_space<vmem>>, vector<1x3x32xbf16>
    %22 = vector.shape_cast %21 : vector<1x3x32xbf16> to vector<3x32xbf16>
    %cst_26 = arith.constant dense<0.000000e+00> : vector<64x32xf32>
    %23 = tpu.matmul %20, %22, %cst_26 {dimension_numbers = #tpu.dot_dimension_numbers<[1], [0], [0], [1], [0, 0, 1, 1], [], []>} : vector<64x3xbf16>, vector<3x32xbf16>, vector<64x32xf32> -> vector<64x32xf32>
    %24 = arith.addf %16, %23 : vector<64x32xf32>
    %c0_27 = arith.constant 0 : index
    %c1_28 = arith.constant 1 : index
    %c0_29 = arith.constant 0 : index
    %c0_30 = arith.constant 0 : index
    %c0_31 = arith.constant 0 : index
    %c0_32 = arith.constant 0 : index
    %25 = vector.load %arg1[%c0_27, %c1_28, %c0_29, %c0_30, %c0_31, %c0_32] : memref<1x2x2x9x9x3xf32, #tpu.memory_space<vmem>>, vector<1x1x1x8x8x3xf32>
    %26 = vector.shape_cast %25 : vector<1x1x1x8x8x3xf32> to vector<8x8x3xf32>
    %27 = vector.shape_cast %26 : vector<8x8x3xf32> to vector<64x3xf32>
    %28 = arith.truncf %27 : vector<64x3xf32> to vector<64x3xbf16>
    %c3 = arith.constant 3 : index
    %c0_33 = arith.constant 0 : index
    %c0_34 = arith.constant 0 : index
    %29 = vector.load %arg2[%c3, %c0_33, %c0_34] : memref<9x3x32xbf16, #tpu.memory_space<vmem>>, vector<1x3x32xbf16>
    %30 = vector.shape_cast %29 : vector<1x3x32xbf16> to vector<3x32xbf16>
    %cst_35 = arith.constant dense<0.000000e+00> : vector<64x32xf32>
    %31 = tpu.matmul %28, %30, %cst_35 {dimension_numbers = #tpu.dot_dimension_numbers<[1], [0], [0], [1], [0, 0, 1, 1], [], []>} : vector<64x3xbf16>, vector<3x32xbf16>, vector<64x32xf32> -> vector<64x32xf32>
    %32 = arith.addf %24, %31 : vector<64x32xf32>
    %c0_36 = arith.constant 0 : index
    %c1_37 = arith.constant 1 : index
    %c1_38 = arith.constant 1 : index
    %c0_39 = arith.constant 0 : index
    %c0_40 = arith.constant 0 : index
    %c0_41 = arith.constant 0 : index
    %33 = vector.load %arg1[%c0_36, %c1_37, %c1_38, %c0_39, %c0_40, %c0_41] : memref<1x2x2x9x9x3xf32, #tpu.memory_space<vmem>>, vector<1x1x1x8x8x3xf32>
    %34 = vector.shape_cast %33 : vector<1x1x1x8x8x3xf32> to vector<8x8x3xf32>
    %35 = vector.shape_cast %34 : vector<8x8x3xf32> to vector<64x3xf32>
    %36 = arith.truncf %35 : vector<64x3xf32> to vector<64x3xbf16>
    %c4 = arith.constant 4 : index
    %c0_42 = arith.constant 0 : index
    %c0_43 = arith.constant 0 : index
    %37 = vector.load %arg2[%c4, %c0_42, %c0_43] : memref<9x3x32xbf16, #tpu.memory_space<vmem>>, vector<1x3x32xbf16>
    %38 = vector.shape_cast %37 : vector<1x3x32xbf16> to vector<3x32xbf16>
    %cst_44 = arith.constant dense<0.000000e+00> : vector<64x32xf32>
    %39 = tpu.matmul %36, %38, %cst_44 {dimension_numbers = #tpu.dot_dimension_numbers<[1], [0], [0], [1], [0, 0, 1, 1], [], []>} : vector<64x3xbf16>, vector<3x32xbf16>, vector<64x32xf32> -> vector<64x32xf32>
    %40 = arith.addf %32, %39 : vector<64x32xf32>
    %c0_45 = arith.constant 0 : index
    %c1_46 = arith.constant 1 : index
    %c0_47 = arith.constant 0 : index
    %c0_48 = arith.constant 0 : index
    %c1_49 = arith.constant 1 : index
    %c0_50 = arith.constant 0 : index
    %41 = vector.load %arg1[%c0_45, %c1_46, %c0_47, %c0_48, %c1_49, %c0_50] : memref<1x2x2x9x9x3xf32, #tpu.memory_space<vmem>>, vector<1x1x1x8x8x3xf32>
    %42 = vector.shape_cast %41 : vector<1x1x1x8x8x3xf32> to vector<8x8x3xf32>
    %43 = vector.shape_cast %42 : vector<8x8x3xf32> to vector<64x3xf32>
    %44 = arith.truncf %43 : vector<64x3xf32> to vector<64x3xbf16>
    %c5 = arith.constant 5 : index
    %c0_51 = arith.constant 0 : index
    %c0_52 = arith.constant 0 : index
    %45 = vector.load %arg2[%c5, %c0_51, %c0_52] : memref<9x3x32xbf16, #tpu.memory_space<vmem>>, vector<1x3x32xbf16>
    %46 = vector.shape_cast %45 : vector<1x3x32xbf16> to vector<3x32xbf16>
    %cst_53 = arith.constant dense<0.000000e+00> : vector<64x32xf32>
    %47 = tpu.matmul %44, %46, %cst_53 {dimension_numbers = #tpu.dot_dimension_numbers<[1], [0], [0], [1], [0, 0, 1, 1], [], []>} : vector<64x3xbf16>, vector<3x32xbf16>, vector<64x32xf32> -> vector<64x32xf32>
    %48 = arith.addf %40, %47 : vector<64x32xf32>
    %c0_54 = arith.constant 0 : index
    %c0_55 = arith.constant 0 : index
    %c0_56 = arith.constant 0 : index
    %c1_57 = arith.constant 1 : index
    %c0_58 = arith.constant 0 : index
    %c0_59 = arith.constant 0 : index
    %49 = vector.load %arg1[%c0_54, %c0_55, %c0_56, %c1_57, %c0_58, %c0_59] : memref<1x2x2x9x9x3xf32, #tpu.memory_space<vmem>>, vector<1x1x1x8x8x3xf32>
    %50 = vector.shape_cast %49 : vector<1x1x1x8x8x3xf32> to vector<8x8x3xf32>
    %51 = vector.shape_cast %50 : vector<8x8x3xf32> to vector<64x3xf32>
    %52 = arith.truncf %51 : vector<64x3xf32> to vector<64x3xbf16>
    %c6 = arith.constant 6 : index
    %c0_60 = arith.constant 0 : index
    %c0_61 = arith.constant 0 : index
    %53 = vector.load %arg2[%c6, %c0_60, %c0_61] : memref<9x3x32xbf16, #tpu.memory_space<vmem>>, vector<1x3x32xbf16>
    %54 = vector.shape_cast %53 : vector<1x3x32xbf16> to vector<3x32xbf16>
    %cst_62 = arith.constant dense<0.000000e+00> : vector<64x32xf32>
    %55 = tpu.matmul %52, %54, %cst_62 {dimension_numbers = #tpu.dot_dimension_numbers<[1], [0], [0], [1], [0, 0, 1, 1], [], []>} : vector<64x3xbf16>, vector<3x32xbf16>, vector<64x32xf32> -> vector<64x32xf32>
    %56 = arith.addf %48, %55 : vector<64x32xf32>
    %c0_63 = arith.constant 0 : index
    %c0_64 = arith.constant 0 : index
    %c1_65 = arith.constant 1 : index
    %c1_66 = arith.constant 1 : index
    %c0_67 = arith.constant 0 : index
    %c0_68 = arith.constant 0 : index
    %57 = vector.load %arg1[%c0_63, %c0_64, %c1_65, %c1_66, %c0_67, %c0_68] : memref<1x2x2x9x9x3xf32, #tpu.memory_space<vmem>>, vector<1x1x1x8x8x3xf32>
    %58 = vector.shape_cast %57 : vector<1x1x1x8x8x3xf32> to vector<8x8x3xf32>
    %59 = vector.shape_cast %58 : vector<8x8x3xf32> to vector<64x3xf32>
    %60 = arith.truncf %59 : vector<64x3xf32> to vector<64x3xbf16>
    %c7 = arith.constant 7 : index
    %c0_69 = arith.constant 0 : index
    %c0_70 = arith.constant 0 : index
    %61 = vector.load %arg2[%c7, %c0_69, %c0_70] : memref<9x3x32xbf16, #tpu.memory_space<vmem>>, vector<1x3x32xbf16>
    %62 = vector.shape_cast %61 : vector<1x3x32xbf16> to vector<3x32xbf16>
    %cst_71 = arith.constant dense<0.000000e+00> : vector<64x32xf32>
    %63 = tpu.matmul %60, %62, %cst_71 {dimension_numbers = #tpu.dot_dimension_numbers<[1], [0], [0], [1], [0, 0, 1, 1], [], []>} : vector<64x3xbf16>, vector<3x32xbf16>, vector<64x32xf32> -> vector<64x32xf32>
    %64 = arith.addf %56, %63 : vector<64x32xf32>
    %c0_72 = arith.constant 0 : index
    %c0_73 = arith.constant 0 : index
    %c0_74 = arith.constant 0 : index
    %c1_75 = arith.constant 1 : index
    %c1_76 = arith.constant 1 : index
    %c0_77 = arith.constant 0 : index
    %65 = vector.load %arg1[%c0_72, %c0_73, %c0_74, %c1_75, %c1_76, %c0_77] : memref<1x2x2x9x9x3xf32, #tpu.memory_space<vmem>>, vector<1x1x1x8x8x3xf32>
    %66 = vector.shape_cast %65 : vector<1x1x1x8x8x3xf32> to vector<8x8x3xf32>
    %67 = vector.shape_cast %66 : vector<8x8x3xf32> to vector<64x3xf32>
    %68 = arith.truncf %67 : vector<64x3xf32> to vector<64x3xbf16>
    %c8 = arith.constant 8 : index
    %c0_78 = arith.constant 0 : index
    %c0_79 = arith.constant 0 : index
    %69 = vector.load %arg2[%c8, %c0_78, %c0_79] : memref<9x3x32xbf16, #tpu.memory_space<vmem>>, vector<1x3x32xbf16>
    %70 = vector.shape_cast %69 : vector<1x3x32xbf16> to vector<3x32xbf16>
    %cst_80 = arith.constant dense<0.000000e+00> : vector<64x32xf32>
    %71 = tpu.matmul %68, %70, %cst_80 {dimension_numbers = #tpu.dot_dimension_numbers<[1], [0], [0], [1], [0, 0, 1, 1], [], []>} : vector<64x3xbf16>, vector<3x32xbf16>, vector<64x32xf32> -> vector<64x32xf32>
    %72 = arith.addf %64, %71 : vector<64x32xf32>
    %c0_81 = arith.constant 0 : index
    %c0_82 = arith.constant 0 : index
    %73 = vector.load %arg3[%c0_81, %c0_82] : memref<1x32xf32, #tpu.memory_space<vmem>>, vector<1x32xf32>
    %74 = vector.broadcast %73 : vector<1x32xf32> to vector<64x32xf32>
    %75 = arith.addf %72, %74 : vector<64x32xf32>
    %76 = arith.negf %75 : vector<64x32xf32>
    %77 = math.exp %76 : vector<64x32xf32>
    %cst_83 = arith.constant 1.000000e+00 : f32
    %78 = vector.broadcast %cst_83 : f32 to vector<64x32xf32>
    %79 = arith.addf %78, %77 : vector<64x32xf32>
    %80 = arith.divf %78, %79 : vector<64x32xf32>
    %81 = arith.mulf %75, %80 : vector<64x32xf32>
    %82 = arith.truncf %81 : vector<64x32xf32> to vector<64x32xbf16>
    %c0_84 = arith.constant 0 : index
    %c0_85 = arith.constant 0 : index
    %83 = vector.load %arg4[%c0_84, %c0_85] : memref<32x128xbf16, #tpu.memory_space<vmem>>, vector<32x128xbf16>
    %cst_86 = arith.constant dense<0.000000e+00> : vector<64x128xf32>
    %84 = tpu.matmul %82, %83, %cst_86 {dimension_numbers = #tpu.dot_dimension_numbers<[1], [0], [0], [1], [0, 0, 1, 1], [], []>} : vector<64x32xbf16>, vector<32x128xbf16>, vector<64x128xf32> -> vector<64x128xf32>
    %c0_87 = arith.constant 0 : index
    %c0_88 = arith.constant 0 : index
    %85 = vector.load %arg5[%c0_87, %c0_88] : memref<1x128xf32, #tpu.memory_space<vmem>>, vector<1x128xf32>
    %86 = vector.broadcast %85 : vector<1x128xf32> to vector<64x128xf32>
    %87 = arith.addf %84, %86 : vector<64x128xf32>
    %88 = arith.negf %87 : vector<64x128xf32>
    %89 = math.exp %88 : vector<64x128xf32>
    %cst_89 = arith.constant 1.000000e+00 : f32
    %90 = vector.broadcast %cst_89 : f32 to vector<64x128xf32>
    %91 = arith.addf %90, %89 : vector<64x128xf32>
    %92 = arith.divf %90, %91 : vector<64x128xf32>
    %93 = arith.mulf %87, %92 : vector<64x128xf32>
    %cst_90 = arith.constant dense<0.000000e+00> : vector<128xf32>
    %94 = vector.multi_reduction <add>, %93, %cst_90 [0] : vector<64x128xf32> to vector<128xf32>
    %95 = vector.shape_cast %94 : vector<128xf32> to vector<1x128xf32>
    %cst_91 = arith.constant 6.400000e+01 : f32
    %96 = vector.broadcast %cst_91 : f32 to vector<1x128xf32>
    %97 = arith.divf %95, %96 : vector<1x128xf32>
    %98 = vector.shape_cast %97 : vector<1x128xf32> to vector<1x128xf32>
    %99 = vector.broadcast %98 : vector<1x128xf32> to vector<8x128xf32>
    %100 = arith.truncf %99 : vector<8x128xf32> to vector<8x128xbf16>
    %c0_92 = arith.constant 0 : index
    %c0_93 = arith.constant 0 : index
    %101 = vector.load %arg6[%c0_92, %c0_93] : memref<128x128xbf16, #tpu.memory_space<vmem>>, vector<128x128xbf16>
    %cst_94 = arith.constant dense<0.000000e+00> : vector<8x128xf32>
    %102 = tpu.matmul %100, %101, %cst_94 {dimension_numbers = #tpu.dot_dimension_numbers<[1], [0], [0], [1], [0, 0, 1, 1], [], []>} : vector<8x128xbf16>, vector<128x128xbf16>, vector<8x128xf32> -> vector<8x128xf32>
    %c0_95 = arith.constant 0 : index
    %c0_96 = arith.constant 0 : index
    %103 = vector.load %arg7[%c0_95, %c0_96] : memref<1x128xf32, #tpu.memory_space<vmem>>, vector<1x128xf32>
    %104 = vector.broadcast %103 : vector<1x128xf32> to vector<8x128xf32>
    %105 = arith.addf %102, %104 : vector<8x128xf32>
    %106 = vector.shape_cast %105 : vector<8x128xf32> to vector<1x8x128xf32>
    %c0_97 = arith.constant 0 : index
    %c0_98 = arith.constant 0 : index
    %c0_99 = arith.constant 0 : index
    %107 = vector.load %arg8[%c0_97, %c0_98, %c0_99] : memref<1x8x128xf32, #tpu.memory_space<vmem>>, vector<1x8x128xf32>
    tpu.vector_store %arg8[%c0_97, %c0_98, %c0_99], %106 {strides = array<i32>} : memref<1x8x128xf32, #tpu.memory_space<vmem>>, vector<1x8x128xf32>,
    return
  }
  func.func @transform_0(%arg0: i32) -> (i32, i32, i32, i32, i32, i32) {
    %c0_i32 = arith.constant 0 : i32
    %c0_i32_0 = arith.constant 0 : i32
    %c0_i32_1 = arith.constant 0 : i32
    %c0_i32_2 = arith.constant 0 : i32
    %c0_i32_3 = arith.constant 0 : i32
    %c0_i32_4 = arith.constant 0 : i32
    return %arg0, %c0_i32, %c0_i32_0, %c0_i32_1, %c0_i32_2, %c0_i32_3 : i32, i32, i32, i32, i32, i32
  }
  func.func @transform_1(%arg0: i32) -> (i32, i32, i32) {
    %c0_i32 = arith.constant 0 : i32
    %c0_i32_0 = arith.constant 0 : i32
    %c0_i32_1 = arith.constant 0 : i32
    %c0_i32_2 = arith.constant 0 : i32
    return %c0_i32, %c0_i32_0, %c0_i32_1 : i32, i32, i32
  }
  func.func @transform_2(%arg0: i32) -> (i32, i32) {
    %c0_i32 = arith.constant 0 : i32
    %c0_i32_0 = arith.constant 0 : i32
    %c0_i32_1 = arith.constant 0 : i32
    return %c0_i32, %c0_i32_0 : i32, i32
  }
  func.func @transform_3(%arg0: i32) -> (i32, i32) {
    %c0_i32 = arith.constant 0 : i32
    %c0_i32_0 = arith.constant 0 : i32
    %c0_i32_1 = arith.constant 0 : i32
    return %c0_i32, %c0_i32_0 : i32, i32
  }
  func.func @transform_4(%arg0: i32) -> (i32, i32) {
    %c0_i32 = arith.constant 0 : i32
    %c0_i32_0 = arith.constant 0 : i32
    %c0_i32_1 = arith.constant 0 : i32
    return %c0_i32, %c0_i32_0 : i32, i32
  }
  func.func @transform_5(%arg0: i32) -> (i32, i32) {
    %c0_i32 = arith.constant 0 : i32
    %c0_i32_0 = arith.constant 0 : i32
    %c0_i32_1 = arith.constant 0 : i32
    return %c0_i32, %c0_i32_0 : i32, i32
  }
  func.func @transform_6(%arg0: i32) -> (i32, i32) {
    %c0_i32 = arith.constant 0 : i32
    %c0_i32_0 = arith.constant 0 : i32
    %c0_i32_1 = arith.constant 0 : i32
    return %c0_i32, %c0_i32_0 : i32, i32
  }
  func.func @transform_7(%arg0: i32) -> (i32, i32, i32) {
    %c0_i32 = arith.constant 0 : i32
    %c0_i32_0 = arith.constant 0 : i32
    %c0_i32_1 = arith.constant 0 : i32
    return %arg0, %c0_i32, %c0_i32_0 : i32, i32, i32
  }
}

</mosaic_0001>

<bundles_post_ra>
// kernel: effnet_basic_forward.1
= control target key start
LH: loop header
LB: loop body
LE: loop exit
PB: predicated region body
PF: predicated region fallthrough
CT: control target
= control target key end

     0   :  { %s2063_s24 = smov 0   ;;  %s2374_s0 = inlined_call_operand.vmem [shape: f32[2,2,2,9,9,3], index: 0, kind: input, shape index: {}]   ;;  %s2375_s1 = inlined_call_operand.vmem [shape: bf16[9,3,32], index: 1, kind: input, shape index: {}]   ;;  %s2376_s2 = inlined_call_operand.vmem [shape: f32[1,32], index: 2, kind: input, shape index: {}]   ;;  %s2377_s3 = inlined_call_operand.vmem [shape: bf16[32,128], index: 3, kind: input, shape index: {}]   ;;  %s2378_s4 = inlined_call_operand.vmem [shape: f32[1,128], index: 4, kind: input, shape index: {}]   ;;  %s2379_s5 = inlined_call_operand.vmem [shape: bf16[128,128], index: 5, kind: input, shape index: {}]   ;;  %s2380_s6 = inlined_call_operand.vmem [shape: f32[1,128], index: 6, kind: input, shape index: {}]   ;;  %s2381_s7 = inlined_call_operand.vmem [shape: f32[2,8,128], index: 7, kind: output, shape index: {}]  }
   0x1 LB: > { %s1602_s25 = sadd.s32 4294967295, %s2018_s24   ;;  %p1606_p0 = scmp.ge.s32.totalorder %s2018_s24, 1  ;;  %s2018_s24 = sphi %s2063_s24, %s17_s24  }
   0x2   : > { %p237_p1 = scmp.lt.s32.totalorder %s2018_s24, 3 }
   0x4   : > { %p238_p2 = pnand %p1606_p0, %p237_p1 }
   0x6   : > { %241 = sbr.rel (%p238_p2) target bundleno = 791 (0x317), region = 48 }
   0xb   : > { %v1617_v0 = vld [vmem:[%s2375_s1 + $0x2] sm:$0x3]  ;;  %vm319_vm0 = vcmask 1040384   ;;  %vm320_vm1 = vcmask 1041408   ;;  %p268_p3 = scmp.lt.s32.totalorder %s1602_s25, 1  ;;  %v2020_v1 = vmov 65535  }
   0xc   : > { %v321_v2 = vsel %vm319_vm0, 4294967295, %v2020_v1  ;;  %v290_v3 = vld [vmem:[%s2375_s1] sm:$0x3]  ;;  %v1626_v4 = vld [vmem:[%s2375_s1 + $0x4] sm:$0x3]  ;;  %vm306_vm2 = vcmask 23552  }
   0xd   : > { %v2080_v5 = vsel %vm320_vm1, %v321_v2, 0  ;;  %s2391_s25 = smov (!%p268_p3, %s1602_s25), 1  ;;  %v1652_v6 = vld [vmem:[%s2375_s1 + $0x8] sm:$0x3]  ;;  %v1639_v10 = vld [vmem:[%s2375_s1 + $0x6] sm:$0x3] }
   0xe   : > { %v324_v7 = vand.u32 %v1617_v0, %v2080_v5  ;;  %v404_v8 = vand.u32 %v2080_v5, %v290_v3  ;;  %v498_v9 = vand.u32 %v1626_v4, %v2080_v5  ;;  %s1926_s11 = smul.u32 576, %s2391_s25  ;;  %v704_v11 = vand.u32 %v1652_v6, %v2080_v5  ;;  %v1678_v23 = vld [vmem:[%s2375_s1 + $0xc] sm:$0x3]  ;;  %v1665_v51 = vld [vmem:[%s2375_s1 + $0xa] sm:$0x3]  ;;  %s1608_s30 = sshll.u32 %s2391_s25, 3 }
   0xf   : > { %v601_v22 = vand.u32 %v1639_v10, %v2080_v5  ;;  %v909_v33 = vand.u32 %v1678_v23, %v2080_v5  ;;  %v1704_v55 = vld [vmem:[%s2375_s1 + $0x10] sm:$0x3]  ;;  %v806_v59 = vand.u32 %v1665_v51, %v2080_v5  ;;  %vm1287_vm3 = vcmask 261120   ;;  %s276_s12 = scalar_lea.vmem %s2381_s7, %s1608_s30 }
  0x10   : > { %1804 = vmatprep.subr.bf16.mxu1 %v324_v7  ;;  %1824 = vmatprep.subr.bf16.mxu0 %v498_v9  ;;  %s2098_s16 = scalar_lea.vmem %s2374_s0, %s1926_s11  ;;  %v1114_v0 = vand.u32 %v1704_v55, %v2080_v5  ;;  %vm2022_vm4 = vmmov 0  }
  0x11   : > { %1805 = vmatpush3.bf16.msra.mxu1 %v324_v7  ;;  %1825 = vmatpush3.bf16.msra.mxu0 %v498_v9  ;;  %v1609_v12 = vld [vmem:[%s2098_s16 + $0x90] sm:$0xff]  ;;  %v2102_v13 = vld [vmem:[%s2098_s16 + $0xa0] sm:$0xff] }
  0x12   : > { %1814 = vmatprep.subr.bf16.mxu1 %v404_v8  ;;  %v2105_v14 = vld [vmem:[%s2098_s16 + $0xb0] sm:$0xff]  ;;  %1844 = vmatprep.subr.bf16.mxu0 %v704_v11  ;;  %v300_v15 = vpack.c.bf16 %v2102_v13, %v1609_v12  ;;  %v2109_v16 = vld [vmem:[%s2098_s16 + $0xc0] sm:$0xff] }
  0x13   : > { %v2112_v17 = vld [vmem:[%s2098_s16 + $0xd0] sm:$0xff]  ;;  %v2115_v18 = vld [vmem:[%s2098_s16 + $0xe0] sm:$0xff]  ;;  %v301_v19 = vpack.c.bf16 %v2109_v16, %v2105_v14 }
  0x14   : > { %v302_v20 = vpack.c.bf16 %v2115_v18, %v2112_v17  ;;  %v471_v21 = vld [vmem:[%s2098_s16 + $0x1] sm:$0xff]  ;;  %1806 = vmatprep.mubr.msk.bf16.mxu1 %vm306_vm2, %v300_v15  ;;  %v2128_v24 = vld [vmem:[%s2098_s16 + $0x11] sm:$0xff] }
  0x15   : > { %v2131_v25 = vld [vmem:[%s2098_s16 + $0x21] sm:$0xff]  ;;  %v2134_v26 = vld [vmem:[%s2098_s16 + $0x31] sm:$0xff]  ;;  %1807 = vmatmul.mubr.msk.bf16.vlgmr.msra.gmra.mxu1 %vm306_vm2, %v301_v19  ;;  %v479_v28 = vpack.c.bf16 %v2128_v24, %v471_v21  ;;  %v1691_v19 = vld [vmem:[%s2375_s1 + $0xe] sm:$0x3] }
  0x16   : > { %v2138_v27 = vld [vmem:[%s2098_s16 + $0xf0] sm:$0xff]  ;;  %v480_v29 = vpack.c.bf16 %v2134_v26, %v2131_v25  ;;  %1815 = vmatpush3.bf16.msra.mxu1 %v404_v8  ;;  %1810 = vmatprep.mubr.msk.bf16.mxu1 %vm306_vm2, %v302_v20  ;;  %v2145_v30 = vld [vmem:[%s2098_s16 + $0x100] sm:$0xff] }
  0x17   : > { %v2148_v31 = vld [vmem:[%s2098_s16 + $0x41] sm:$0xff]  ;;  %v2151_v32 = vld [vmem:[%s2098_s16 + $0x51] sm:$0xff]  ;;  %1826 = vmatprep.mubr.msk.bf16.mxu0 %vm306_vm2, %v479_v28  ;;  %1834 = vmatprep.subr.bf16.mxu1 %v601_v22  ;;  %v303_v37 = vpack.c.bf16 %v2145_v30, %v2138_v27 }
  0x18   : > { %v278_v34 = vld [vmem:[%s2098_s16] sm:$0xff]  ;;  %v2157_v35 = vld [vmem:[%s2098_s16 + $0x10] sm:$0xff]  ;;  %v481_v36 = vpack.c.bf16 %v2151_v32, %v2148_v31  ;;  %1827 = vmatmul.mubr.msk.bf16.vlgmr.msra.gmra.mxu0 %vm306_vm2, %v480_v29 }
  0x19   : > { %1845 = vmatpush3.bf16.msra.mxu0 %v704_v11  ;;  %v2166_v38 = vld [vmem:[%s2098_s16 + $0x61] sm:$0xff]  ;;  %v2169_v39 = vld [vmem:[%s2098_s16 + $0x71] sm:$0xff]  ;;  %v286_v40 = vpack.c.bf16 %v2157_v35, %v278_v34 }
  0x1a   : > { %1830 = vmatprep.mubr.msk.bf16.mxu0 %vm306_vm2, %v481_v36  ;;  %v1644_v41 = vld [vmem:[%s2098_s16 + $0x1b0] sm:$0xff]  ;;  %v1645_v42 = vld [vmem:[%s2098_s16 + $0x1c0] sm:$0xff]  ;;  %1864 = vmatprep.subr.bf16.mxu0 %v909_v33  ;;  %v482_v43 = vpack.c.bf16 %v2169_v39, %v2166_v38 }
  0x1b   : > { %v685_v44 = vpack.c.bf16 %v1645_v42, %v1644_v41  ;;  %v280_v45 = vld [vmem:[%s2098_s16 + $0x20] sm:$0xff]  ;;  %v281_v46 = vld [vmem:[%s2098_s16 + $0x30] sm:$0xff]  ;;  %v1095_v41 = vpack.c.bf16 %v2131_v25, %v2128_v24  ;;  %v1097_v24 = vpack.c.bf16 %v2166_v38, %v2151_v32  ;;  %v995_v32 = vpack.c.bf16 %v2138_v27, %v2115_v18 }
  0x1c   : > { %v282_v47 = vld [vmem:[%s2098_s16 + $0x40] sm:$0xff]  ;;  %v283_v48 = vld [vmem:[%s2098_s16 + $0x50] sm:$0xff]  ;;  %v287_v52 = vpack.c.bf16 %v281_v46, %v280_v45  ;;  %v890_v9 = vpack.c.bf16 %v280_v45, %v2157_v35 }
  0x1d   : > { %1811 = vmatmul.mubr.msk.bf16.gmra.mxu1 %vm306_vm2, %v303_v37  ;;  %v1646_v49 = vld [vmem:[%s2098_s16 + $0x1d0] sm:$0xff]  ;;  %v1647_v50 = vld [vmem:[%s2098_s16 + $0x1e0] sm:$0xff]  ;;  %v288_v57 = vpack.c.bf16 %v283_v48, %v282_v47  ;;  %v891_v23 = vpack.c.bf16 %v282_v47, %v281_v46 }
  0x1e   : > { %1816 = vmatprep.mubr.msk.bf16.mxu1 %vm306_vm2, %v286_v40  ;;  %v1648_v53 = vld [vmem:[%s2098_s16 + $0x1f0] sm:$0xff]  ;;  %v1649_v54 = vld [vmem:[%s2098_s16 + $0x200] sm:$0xff]  ;;  %v686_v60 = vpack.c.bf16 %v1647_v50, %v1646_v49 }
  0x1f   : > { %v2195_v56 = vld [vmem:[%s2098_s16 + $0x110] sm:$0xff]  ;;  %v687_v61 = vpack.c.bf16 %v1649_v54, %v1648_v53  ;;  %v284_v62 = vld [vmem:[%s2098_s16 + $0x60] sm:$0xff] }
  0x20   : > { %1831 = vmatmul.mubr.msk.bf16.gmra.mxu0 %vm306_vm2, %v482_v43  ;;  %v996_v58 = vpack.c.bf16 %v2195_v56, %v2145_v30  ;;  %v285_v63 = vld [vmem:[%s2098_s16 + $0x70] sm:$0xff]  ;;  %v1631_v1 = vld [vmem:[%s2098_s16 + $0x120] sm:$0xff]  ;;  %v892_v28 = vpack.c.bf16 %v284_v62, %v283_v48  ;;  %v1096_v48 = vpack.c.bf16 %v2148_v31, %v2134_v26  ;;  %v994_v31 = vpack.c.bf16 %v2112_v17, %v2109_v16 }
  0x21   : > { %1846 = vmatprep.mubr.msk.bf16.mxu0 %vm306_vm2, %v685_v44  ;;  %v1632_v2 = vld [vmem:[%s2098_s16 + $0x130] sm:$0xff]  ;;  %v289_v3 = vpack.c.bf16 %v285_v63, %v284_v62  ;;  %v1651_v6 = vld [vmem:[%s2098_s16 + $0x220] sm:$0xff] }
  0x22   : > { %v1650_v4 = vld [vmem:[%s2098_s16 + $0x210] sm:$0xff]  ;;  %v582_v7 = vpack.c.bf16 %v1632_v2, %v1631_v1  ;;  %v1633_v10 = vld [vmem:[%s2098_s16 + $0x140] sm:$0xff] }
  0x23   : > { %v688_v8 = vpack.c.bf16 %v1651_v6, %v1650_v4  ;;  %v1634_v11 = vld [vmem:[%s2098_s16 + $0x150] sm:$0xff]  ;;  %v1635_v12 = vld [vmem:[%s2098_s16 + $0x160] sm:$0xff] }
  0x24   : > { %v1636_v15 = vld [vmem:[%s2098_s16 + $0x170] sm:$0xff]  ;;  %v583_v20 = vpack.c.bf16 %v1634_v11, %v1633_v10  ;;  %v1637_v29 = vld [vmem:[%s2098_s16 + $0x180] sm:$0xff] }
  0x25   : > { %1817 = vmatmul.mubr.msk.bf16.vlgmr.msra.gmra.mxu1 %vm306_vm2, %v287_v52  ;;  %v584_v21 = vpack.c.bf16 %v1636_v15, %v1635_v12  ;;  %v1657_v34 = vld [vmem:[%s2098_s16 + $0x121] sm:$0xff]  ;;  %v1658_v35 = vld [vmem:[%s2098_s16 + $0x131] sm:$0xff]  ;;  %v993_v52 = vpack.c.bf16 %v2105_v14, %v2102_v13 }
  0x26   : > { %1835 = vmatpush3.bf16.msra.mxu1 %v601_v22  ;;  %1820 = vmatprep.mubr.msk.bf16.mxu1 %vm306_vm2, %v288_v57  ;;  %v1012_v22 = vand.u32 %v1691_v19, %v2080_v5  ;;  %v1677_v5 = vld [vmem:[%s2098_s16 + $0x80] sm:$0xff]  ;;  %v787_v37 = vpack.c.bf16 %v1658_v35, %v1657_v34  ;;  %v1660_v43 = vld [vmem:[%s2098_s16 + $0x151] sm:$0xff]  ;;  %v1938_v13 = vld [vmem:[%s2377_s3 + $0x8] sm:$0xff]  }
  0x27   : > { %1854 = vmatprep.subr.bf16.mxu1 %v806_v59  ;;  %v893_v40 = vpack.c.bf16 %v1677_v5, %v285_v63  ;;  %v1659_v42 = vld [vmem:[%s2098_s16 + $0x141] sm:$0xff]  ;;  %v1662_v45 = vld [vmem:[%s2098_s16 + $0x171] sm:$0xff] }
  0x28   : > { %1847 = vmatmul.mubr.msk.bf16.vlgmr.msra.gmra.mxu0 %vm306_vm2, %v686_v60  ;;  %v1661_v44 = vld [vmem:[%s2098_s16 + $0x161] sm:$0xff]  ;;  %v788_v46 = vpack.c.bf16 %v1660_v43, %v1659_v42  ;;  %v1664_v49 = vld [vmem:[%s2098_s16 + $0x191] sm:$0xff] }
  0x29   : > { %1865 = vmatpush3.bf16.msra.mxu0 %v909_v33  ;;  %1850 = vmatprep.mubr.msk.bf16.mxu0 %vm306_vm2, %v687_v61  ;;  %v1638_v33 = vld [vmem:[%s2098_s16 + $0x190] sm:$0xff]  ;;  %v789_v47 = vpack.c.bf16 %v1662_v45, %v1661_v44  ;;  %v1663_v25 = vld [vmem:[%s2098_s16 + $0x181] sm:$0xff] }
  0x2a   : > { %1884 = vmatprep.subr.bf16.mxu0 %v1114_v0  ;;  %v585_v36 = vpack.c.bf16 %v1638_v33, %v1637_v29  ;;  %v790_v50 = vpack.c.bf16 %v1664_v49, %v1663_v25  ;;  %v1703_v51 = vld [vmem:[%s2098_s16 + $0x81] sm:$0xff] }
  0x2b   : > { %v1098_v26 = vpack.c.bf16 %v1703_v51, %v2169_v39  ;;  %v1939_v14 = vld [vmem:[%s2377_s3] sm:$0xff]  }
  0x2d   : > { %1821 = vmatmul.mubr.msk.bf16.gmra.mxu1 %vm306_vm2, %v289_v3 }
  0x2e   : > { %1836 = vmatprep.mubr.msk.bf16.mxu1 %vm306_vm2, %v582_v7 }
  0x30   : > { %1851 = vmatmul.mubr.msk.bf16.gmra.mxu0 %vm306_vm2, %v688_v8 }
  0x31   : > { %1866 = vmatprep.mubr.msk.bf16.mxu0 %vm306_vm2, %v890_v9 }
  0x35   : > { %1837 = vmatmul.mubr.msk.bf16.vlgmr.msra.gmra.mxu1 %vm306_vm2, %v583_v20 }
  0x36   : > { %1855 = vmatpush3.bf16.msra.mxu1 %v806_v59  ;;  %1840 = vmatprep.mubr.msk.bf16.mxu1 %vm306_vm2, %v584_v21 }
  0x37   : > { %1874 = vmatprep.subr.bf16.mxu1 %v1012_v22 }
  0x38   : > { %1867 = vmatmul.mubr.msk.bf16.vlgmr.msra.gmra.mxu0 %vm306_vm2, %v891_v23 }
  0x39   : > { %1885 = vmatpush3.bf16.msra.mxu0 %v1114_v0  ;;  %1870 = vmatprep.mubr.msk.bf16.mxu0 %vm306_vm2, %v892_v28 }
  0x3d   : > { %1841 = vmatmul.mubr.msk.bf16.gmra.mxu1 %vm306_vm2, %v585_v36 }
  0x3e   : > { %1856 = vmatprep.mubr.msk.bf16.mxu1 %vm306_vm2, %v787_v37 }
  0x40   : > { %1871 = vmatmul.mubr.msk.bf16.gmra.mxu0 %vm306_vm2, %v893_v40 }
  0x41   : > { %1886 = vmatprep.mubr.msk.bf16.mxu0 %vm306_vm2, %v1095_v41 }
  0x45   : > { %1857 = vmatmul.mubr.msk.bf16.vlgmr.msra.gmra.mxu1 %vm306_vm2, %v788_v46 }
  0x46   : > { %1875 = vmatpush3.bf16.msra.mxu1 %v1012_v22  ;;  %1860 = vmatprep.mubr.msk.bf16.mxu1 %vm306_vm2, %v789_v47 }
  0x47   : > { %1894 = vmatprep.subr.bf16.mxu1 %v1938_v13 }
  0x48   : > { %1887 = vmatmul.mubr.msk.bf16.vlgmr.msra.gmra.mxu0 %vm306_vm2, %v1096_v48 }
  0x49   : > { %1890 = vmatprep.mubr.msk.bf16.mxu0 %vm306_vm2, %v1097_v24 }
  0x4d   : > { %1861 = vmatmul.mubr.msk.bf16.gmra.mxu1 %vm306_vm2, %v790_v50 }
  0x4e   : > { %1876 = vmatprep.mubr.msk.bf16.mxu1 %vm306_vm2, %v993_v52 }
  0x50   : > { %1891 = vmatmul.mubr.msk.bf16.gmra.mxu0 %vm306_vm2, %v1098_v26 }
  0x55   : > { %1877 = vmatmul.mubr.msk.bf16.vlgmr.msra.gmra.mxu1 %vm306_vm2, %v994_v31 }
  0x56   : > { %1880 = vmatprep.mubr.msk.bf16.mxu1 %vm306_vm2, %v995_v32  ;;  %1895 = vmatpush3.bf16.msra.mxu1 %v1938_v13 }
  0x57   : > { %1896 = vmatprep.subr.bf16.mxu1 %v1939_v14 }
  0x5a   : > { %1897 = vmatpush3.bf16.msra.mxu1 %v1939_v14 }
  0x5d   : > { %1881 = vmatmul.mubr.msk.bf16.gmra.mxu1 %vm306_vm2, %v996_v58 }
  0xd5   : > { %v1808_v16 = vpop.f32.mrf.mxu1 }
  0xd7   : > { %v360_v17 = vpop.f32.mrf.mxu1 }
  0xd8   : > { %v1828_v18 = vpop.f32.mrf.mxu0 }
  0xd9   : > { %v1809_v27 = vpop.f32.mrf.mxu1 }
  0xda   : > { %v534_v38 = vpop.f32.mrf.mxu0 }
  0xdb   : > { %v363_v30 = vpop.f32.mrf.mxu1 }
  0xdc   : > { %v1829_v39 = vpop.f32.mrf.mxu0 }
  0xdd   : > { %v1812_v53 = vpop.f32.mrf.mxu1 }
  0xde   : > { %v537_v54 = vpop.f32.mrf.mxu0 }
  0xdf   : > { %v376_v55 = vpop.f32.mrf.mxu1 }
  0xe0   : > { %v2276_v56 = vpop.f32.mrf.mxu0 }
  0xe1   : > { %v1813_v57 = vpop.f32.mrf.mxu1 }
  0xe2   : > { %v2278_v58 = vpop.f32.mrf.mxu0 }
  0xe3   : > { %v379_v59 = vpop.f32.mrf.mxu1 }
  0xe4   : > { %v2280_v60 = vpop.f32.mrf.mxu0 }
  0xe5   : > { %v1818_v61 = vpop.f32.mrf.mxu1 }
  0xe6   : > { %v2282_v62 = vpop.f32.mrf.mxu0  ;;  %v449_v42 = vadd.f32 %v1818_v61, %v1808_v16 }
  0xe7   : > { %v440_v63 = vpop.f32.mrf.mxu1 }
  0xe8   : > { %v1848_v0 = vpop.f32.mrf.mxu0  ;;  %v441_v45 = vadd.f32 %v440_v63, %v360_v17  ;;  %v567_v24 = vadd.f32 %v1828_v18, %v449_v42 }
  0xe9   : > { %v1819_v1 = vpop.f32.mrf.mxu1 }
  0xea   : > { %v740_v2 = vpop.f32.mrf.mxu0  ;;  %v452_v48 = vadd.f32 %v1819_v1, %v1809_v27  ;;  %v565_v52 = vadd.f32 %v534_v38, %v441_v45 }
  0xeb   : > { %v443_v3 = vpop.f32.mrf.mxu1 }
  0xec   : > { %v1849_v4 = vpop.f32.mrf.mxu0  ;;  %v444_v25 = vadd.f32 %v443_v3, %v363_v30  ;;  %v568_v32 = vadd.f32 %v1829_v39, %v452_v48 }
  0xed   : > { %v1822_v6 = vpop.f32.mrf.mxu1 }
  0xee   : > { %v743_v7 = vpop.f32.mrf.mxu0  ;;  %v465_v13 = vadd.f32 %v1822_v6, %v1812_v53  ;;  %v566_v14 = vadd.f32 %v537_v54, %v444_v25 }
  0xef   : > { %v456_v8 = vpop.f32.mrf.mxu1 }
  0xf0   : > { %v2284_v9 = vpop.f32.mrf.mxu0  ;;  %v571_v1 = vadd.f32 %v2276_v56, %v465_v13 }
  0xf1   : > { %v1823_v10 = vpop.f32.mrf.mxu1 }
  0xf2   : > { %v2286_v11 = vpop.f32.mrf.mxu0  ;;  %v468_v63 = vadd.f32 %v1823_v10, %v1813_v57 }
  0xf3   : > { %v459_v12 = vpop.f32.mrf.mxu1 }
  0xf4   : > { %v2288_v15 = vpop.f32.mrf.mxu0  ;;  %v460_v30 = vadd.f32 %v459_v12, %v379_v59  ;;  %v572_v6 = vadd.f32 %v2280_v60, %v468_v63  ;;  %v1709_v60 = vld [vmem:[%s2376_s2] ss:$0 sm:$0xff] }
  0xf5   : > { %v1838_v19 = vpop.f32.mrf.mxu1 }
  0xf6   : > { %v2290_v20 = vpop.f32.mrf.mxu0  ;;  %v670_v51 = vadd.f32 %v1838_v19, %v567_v24 }
  0xf7   : > { %v637_v21 = vpop.f32.mrf.mxu1 }
  0xf8   : > { %v1868_v22 = vpop.f32.mrf.mxu0  ;;  %v668_v31 = vadd.f32 %v637_v21, %v565_v52  ;;  %v773_v17 = vadd.f32 %v1848_v0, %v670_v51 }
  0xf9   : > { %v1839_v23 = vpop.f32.mrf.mxu1 }
  0xfa   : > { %v945_v28 = vpop.f32.mrf.mxu0  ;;  %v771_v18 = vadd.f32 %v740_v2, %v668_v31  ;;  %v570_v2 = vadd.f32 %v2282_v62, %v460_v30 }
  0xfb   : > { %v640_v29 = vpop.f32.mrf.mxu1 }
  0xfc   : > { %v2292_v33 = vpop.f32.mrf.mxu0 }
  0xfd   : > { %v1842_v34 = vpop.f32.mrf.mxu1 }
  0xfe   : > { %v2294_v35 = vpop.f32.mrf.mxu0  ;;  %v674_v54 = vadd.f32 %v1842_v34, %v571_v1 }
  0xff   : > { %v653_v36 = vpop.f32.mrf.mxu1 }
 0x100   : > { %v2296_v5 = vpop.f32.mrf.mxu0 }
 0x101   : > { %2382 = vst [vmem:[#allocation2_spill] sm:$0xff] %v2296_v5  ;;  %v1843_v37 = vpop.f32.mrf.mxu1 }
 0x102   : > { %v2298_v40 = vpop.f32.mrf.mxu0  ;;  %v675_v21 = vadd.f32 %v1843_v37, %v572_v6 }
 0x103   : > { %2383 = vst [vmem:[#allocation3_spill] sm:$0xff] %v2298_v40  ;;  %v656_v41 = vpop.f32.mrf.mxu1  ;;  %v671_v40 = vadd.f32 %v1839_v23, %v568_v32 }
 0x104   : > { %v2300_v43 = vpop.f32.mrf.mxu0  ;;  %v673_v42 = vadd.f32 %v656_v41, %v570_v2  ;;  %v778_v37 = vadd.f32 %v2288_v15, %v675_v21 }
 0x105   : > { %2384 = vst [vmem:[#allocation4_spill] sm:$0xff] %v2300_v43  ;;  %v1858_v44 = vpop.f32.mrf.mxu1  ;;  %v457_v43 = vadd.f32 %v456_v8, %v376_v55  ;;  %v774_v53 = vadd.f32 %v1849_v4, %v671_v40 }
 0x106   : > { %v2302_v46 = vpop.f32.mrf.mxu0  ;;  %v875_v27 = vadd.f32 %v1858_v44, %v773_v17 }
 0x107   : > { %2385 = vst [vmem:[#allocation5_spill] sm:$0xff] %v2302_v46  ;;  %v842_v47 = vpop.f32.mrf.mxu1  ;;  %v669_v46 = vadd.f32 %v640_v29, %v566_v14  ;;  %v569_v19 = vadd.f32 %v2278_v58, %v457_v43  ;;  %v777_v58 = vadd.f32 %v2284_v9, %v674_v54 }
 0x108   : > { %v1888_v50 = vpop.f32.mrf.mxu0  ;;  %v873_v39 = vadd.f32 %v842_v47, %v771_v18  ;;  %v978_v10 = vadd.f32 %v1868_v22, %v875_v27  ;;  %v776_v47 = vadd.f32 %v2290_v20, %v673_v42 }
 0x109   : > { %v1859_v49 = vpop.f32.mrf.mxu1  ;;  %v772_v55 = vadd.f32 %v743_v7, %v669_v46  ;;  %v672_v0 = vadd.f32 %v653_v36, %v569_v19 }
 0x10a   : > { %v1150_v61 = vpop.f32.mrf.mxu0  ;;  %v876_v57 = vadd.f32 %v1859_v49, %v774_v53  ;;  %v976_v29 = vadd.f32 %v945_v28, %v873_v39  ;;  %v2387_v31 = vld [vmem:[#allocation3_spill] sm:$0xff] }
 0x10b   : > { %v845_v26 = vpop.f32.mrf.mxu1  ;;  %v775_v7 = vadd.f32 %v2286_v11, %v672_v0 }
 0x10c   : > { %v1889_v38 = vpop.f32.mrf.mxu0  ;;  %v874_v59 = vadd.f32 %v845_v26, %v772_v55  ;;  %v979_v36 = vadd.f32 %v2292_v33, %v876_v57  ;;  %v2388_v14 = vld [vmem:[#allocation4_spill] sm:$0xff] }
 0x10d   : > { %v1862_v16 = vpop.f32.mrf.mxu1 }
 0x10e   : > { %v1153_v56 = vpop.f32.mrf.mxu0  ;;  %v879_v62 = vadd.f32 %v1862_v16, %v777_v58  ;;  %v977_v28 = vadd.f32 %v2294_v35, %v874_v59  ;;  %v2389_v1 = vld [vmem:[#allocation5_spill] sm:$0xff] }
 0x10f   : > { %v858_v5 = vpop.f32.mrf.mxu1 }
 0x110   : > { %v1892_v43 = vpop.f32.mrf.mxu0  ;;  %v877_v41 = vadd.f32 %v858_v5, %v775_v7 }
 0x111   : > { %v1863_v3 = vpop.f32.mrf.mxu1 }
 0x112   : > { %v880_v46 = vadd.f32 %v1863_v3, %v778_v37  ;;  %v1166_v49 = vpop.f32.mrf.mxu0  ;;  %v980_v32 = vadd.f32 %v2387_v31, %v877_v41 }
 0x113   : > { %v861_v8 = vpop.f32.mrf.mxu1 }
 0x114   : > { %v878_v15 = vadd.f32 %v861_v8, %v776_v47  ;;  %v983_v16 = vadd.f32 %v2388_v14, %v880_v46  ;;  %v1893_v18 = vpop.f32.mrf.mxu0  ;;  %v1941_v14 = vld [vmem:[%s2379_s5 + $0x30] sm:$0xff]  }
 0x115   : > { %v1878_v12 = vpop.f32.mrf.mxu1 }
 0x116   : > { %v1081_v23 = vadd.f32 %v1878_v12, %v978_v10  ;;  %v981_v3 = vadd.f32 %v2389_v1, %v878_v15  ;;  %v1169_v57 = vpop.f32.mrf.mxu0 }
 0x117   : > { %v1048_v4 = vpop.f32.mrf.mxu1 }
 0x118   : > { %v1183_v34 = vadd.f32 %v1888_v50, %v1081_v23  ;;  %v1079_v22 = vadd.f32 %v1048_v4, %v976_v29  ;;  %v2386_v50 = vld [vmem:[#allocation2_spill] sm:$0xff] }
 0x119   : > { %v1879_v40 = vpop.f32.mrf.mxu1  ;;  %v982_v51 = vadd.f32 %v2386_v50, %v879_v62 }
 0x11a   : > { %v2316_v9 = vadd.f32 %v1709_v60, %v1183_v34  ;;  %v1181_v44 = vadd.f32 %v1150_v61, %v1079_v22  ;;  %v1082_v45 = vadd.f32 %v1879_v40, %v979_v36 }
 0x11b   : > { %v1051_v11 = vpop.f32.mrf.mxu1 }
 0x11c   : > { %v1712_v48 = vmul.f32 -1.442695, %v2316_v9  ;;  %v2320_v24 = vadd.f32 %v1709_v60, %v1181_v44  ;;  %v1184_v33 = vadd.f32 %v1889_v38, %v1082_v45  ;;  %v1080_v25 = vadd.f32 %v1051_v11, %v977_v28 }
 0x11d   : > { %v1882_v35 = vpop.f32.mrf.mxu1 }
 0x11e   : > { %v1710_v5 = vmul.f32 -1.442695, %v2320_v24  ;;  %v2324_v52 = vadd.f32 %v1709_v60, %v1184_v33  ;;  %v1182_v26 = vadd.f32 %v1153_v56, %v1080_v25  ;;  %1948 = vpow2.f32 %v1712_v48 }
 0x11f   : > { %v1085_v20 = vadd.f32 %v1882_v35, %v982_v51  ;;  %v1064_v13 = vpop.f32.mrf.mxu1 }
 0x120   : > { %1950 = vpow2.f32 %v1710_v5  ;;  %v1713_v61 = vmul.f32 -1.442695, %v2324_v52  ;;  %v1197_v17 = vadd.f32 %v1709_v60, %v1182_v26  ;;  %v1083_v63 = vadd.f32 %v1064_v13, %v980_v32 }
 0x121   : > { %v1187_v27 = vadd.f32 %v1892_v43, %v1085_v20  ;;  %v1883_v30 = vpop.f32.mrf.mxu1  ;;  %v2021_v13 = vmov 0.0  }
 0x122   : > { %1952 = vpow2.f32 %v1713_v61  ;;  %v1711_v38 = vmul.f32 -1.442695, %v1197_v17  ;;  %v1185_v19 = vadd.f32 %v1166_v49, %v1083_v63  ;;  %v1086_v39 = vadd.f32 %v1883_v30, %v983_v16  ;;  %1906 = vmatprep.subr.bf16.mxu0 %v2021_v13  ;;  %v1942_v16 = vld [vmem:[%s2379_s5 + $0x28] sm:$0xff]   ;;  %v1943_v61 = vld [vmem:[%s2379_s5 + $0x20] sm:$0xff]   ;;  %v1945_v63 = vld [vmem:[%s2379_s5 + $0x10] sm:$0xff]   ;;  %1922 = vmatprep.mubr.msk.bf16.mxu0 %vm2022_vm4, %v2021_v13 }
 0x123   : > { %v1202_v53 = vadd.f32 %v1709_v60, %v1187_v27  ;;  %v1067_v54 = vpop.f32.mrf.mxu1  ;;  %v1946_v27 = vld [vmem:[%s2379_s5 + $0x8] sm:$0xff]   ;;  %v1718_v30 = vld [vmem:[%s2378_s4] ss:$0 sm:$0xff] }
 0x124   : > { %1954 = vpow2.f32 %v1711_v38  ;;  %v1200_v6 = vadd.f32 %v1709_v60, %v1185_v19  ;;  %v1188_v55 = vadd.f32 %v1893_v18, %v1086_v39  ;;  %v1084_v8 = vadd.f32 %v1067_v54, %v981_v3  ;;  %v1947_v18 = vld [vmem:[%s2379_s5] sm:$0xff]  }
 0x125   : > { %v1716_v0 = vmul.f32 -1.442695, %v1202_v53 }
 0x126   : > { %v1714_v10 = vmul.f32 -1.442695, %v1200_v6  ;;  %v1203_v21 = vadd.f32 %v1709_v60, %v1188_v55  ;;  %v1186_v2 = vadd.f32 %v1169_v57, %v1084_v8 }
 0x127   : > { %1956 = vpow2.f32 %v1716_v0 }
 0x128   : > { %1958 = vpow2.f32 %v1714_v10  ;;  %v1717_v59 = vmul.f32 -1.442695, %v1203_v21  ;;  %v1201_v12 = vadd.f32 %v1709_v60, %v1186_v2 }
 0x12a   : > { %1960 = vpow2.f32 %v1717_v59  ;;  %v1715_v56 = vmul.f32 -1.442695, %v1201_v12 }
 0x12b   : > { %v1949_v23 = vpop.eup %1948 }
 0x12c   : > { %1962 = vpow2.f32 %v1715_v56  ;;  %v1230_v4 = vadd.f32 1.0, %v1949_v23 }
 0x12d   : > { %v1951_v29 = vpop.eup %1950 }
 0x12e   : > { %v1228_v42 = vadd.f32 1.0, %v1951_v29 }
 0x12f   : > { %v1953_v58 = vpop.eup %1952 }
 0x130   : > { %v1231_v7 = vadd.f32 1.0, %v1953_v58  ;;  %1964 = vrcp.f32 %v1228_v42 }
 0x131   : > { %v1955_v34 = vpop.eup %1954 }
 0x132   : > { %1966 = vrcp.f32 %v1231_v7  ;;  %v1229_v22 = vadd.f32 1.0, %v1955_v34 }
 0x133   : > { %1968 = vrcp.f32 %v1230_v4 }
 0x134   : > { %v1957_v36 = vpop.eup %1956  ;;  %1970 = vrcp.f32 %v1229_v22 }
 0x135   : > { %v1959_v62 = vpop.eup %1958  ;;  %v1234_v60 = vadd.f32 1.0, %v1957_v36 }
 0x136   : > { %v1232_v37 = vadd.f32 1.0, %v1959_v62 }
 0x137   : > { %v1961_v40 = vpop.eup %1960 }
 0x138   : > { %v1235_v43 = vadd.f32 1.0, %v1961_v40  ;;  %1972 = vrcp.f32 %v1232_v37 }
 0x139   : > { %v1963_v28 = vpop.eup %1962 }
 0x13a   : > { %1974 = vrcp.f32 %v1235_v43  ;;  %v1233_v41 = vadd.f32 1.0, %v1963_v28 }
 0x13b   : > { %1976 = vrcp.f32 %v1234_v60 }
 0x13c   : > { %1978 = vrcp.f32 %v1233_v41 }
 0x13d   : > { %v1965_v44 = vpop.eup %1964 }
 0x13e   : > { %v1252_v48 = vmul.f32 %v1965_v44, %v2320_v24 }
 0x13f   : > { %v1967_v45 = vpop.eup %1966 }
 0x140   : > { %v1969_v46 = vpop.eup %1968  ;;  %v1255_v11 = vmul.f32 %v1967_v45, %v2324_v52 }
 0x141   : > { %v1971_v47 = vpop.eup %1970  ;;  %v1254_v25 = vmul.f32 %v1969_v46, %v2316_v9  ;;  %v1940_v9 = vld [vmem:[%s2379_s5 + $0x38] sm:$0xff]  }
 0x142   : > { %v1253_v33 = vmul.f32 %v1971_v47, %v1197_v17  ;;  %1907 = vmatpush3.bf16.msra.mxu0 %v1940_v9  ;;  %v1944_v17 = vld [vmem:[%s2379_s5 + $0x18] sm:$0xff]  }
 0x143   : > { %v1261_v49 = vpack.c.bf16 %v1255_v11, %v1254_v25  ;;  %1908 = vmatprep.subr.bf16.mxu0 %v2021_v13 }
 0x144   : > { %v1260_v15 = vpack.c.bf16 %v1253_v33, %v1252_v48 }
 0x145   : > { %v1973_v50 = vpop.eup %1972 }
 0x146   : > { %1898 = vmatprep.mubr.msk.bf16.mxu1 %vm1287_vm3, %v1260_v15  ;;  %v1256_v31 = vmul.f32 %v1973_v50, %v1200_v6  ;;  %1909 = vmatpush3.bf16.msra.mxu0 %v1941_v14 }
 0x147   : > { %v1975_v51 = vpop.eup %1974  ;;  %1899 = vmatmul.mubr.msk.bf16.vlgmr.msra.gmra.mxu1 %vm1287_vm3, %v1261_v49  ;;  %1910 = vmatprep.subr.bf16.mxu0 %v2021_v13 }
 0x148   : > { %v1977_v35 = vpop.eup %1976  ;;  %v1259_v26 = vmul.f32 %v1975_v51, %v1203_v21 }
 0x149   : > { %v1979_v5 = vpop.eup %1978  ;;  %v1258_v52 = vmul.f32 %v1977_v35, %v1202_v53 }
 0x14a   : > { %v1257_v32 = vmul.f32 %v1979_v5, %v1201_v12  ;;  %1911 = vmatpush3.bf16.msra.mxu0 %v1942_v16 }
 0x14b   : > { %v1263_v24 = vpack.c.bf16 %v1259_v26, %v1258_v52  ;;  %1912 = vmatprep.subr.bf16.mxu0 %v2021_v13 }
 0x14c   : > { %v1262_v20 = vpack.c.bf16 %v1257_v32, %v1256_v31 }
 0x14e   : > { %1902 = vmatprep.mubr.msk.bf16.mxu1 %vm1287_vm3, %v1262_v20  ;;  %1913 = vmatpush3.bf16.msra.mxu0 %v1943_v61 }
 0x14f   : > { %1903 = vmatmul.mubr.msk.bf16.gmra.mxu1 %vm1287_vm3, %v1263_v24  ;;  %1914 = vmatprep.subr.bf16.mxu0 %v2021_v13 }
 0x152   : > { %1915 = vmatpush3.bf16.msra.mxu0 %v1944_v17 }
 0x153   : > { %1916 = vmatprep.subr.bf16.mxu0 %v2021_v13 }
 0x156   : > { %1917 = vmatpush3.bf16.msra.mxu0 %v1945_v63 }
 0x157   : > { %1918 = vmatprep.subr.bf16.mxu0 %v2021_v13 }
 0x15a   : > { %1919 = vmatpush3.bf16.msra.mxu0 %v1946_v27 }
 0x15b   : > { %1920 = vmatprep.subr.bf16.mxu0 %v2021_v13 }
 0x15e   : > { %1921 = vmatpush3.bf16.msra.mxu0 %v1947_v18 }
 0x207   : > { %v1900_v1 = vpop.f32.mrf.mxu1 }
 0x208   : > { %v1343_v3 = vadd.f32 %v1900_v1, %v1718_v30 }
 0x209   : > { %v1334_v38 = vpop.f32.mrf.mxu1 }
 0x20a   : > { %v1727_v19 = vmul.f32 -1.442695, %v1343_v3  ;;  %v1335_v39 = vadd.f32 %v1718_v30, %v1334_v38 }
 0x20b   : > { %v1901_v53 = vpop.f32.mrf.mxu1 }
 0x20c   : > { %v1725_v54 = vmul.f32 -1.442695, %v1335_v39  ;;  %v1346_v6 = vadd.f32 %v1901_v53, %v1718_v30  ;;  %1980 = vpow2.f32 %v1727_v19 }
 0x20d   : > { %v1337_v55 = vpop.f32.mrf.mxu1 }
 0x20e   : > { %1982 = vpow2.f32 %v1725_v54  ;;  %v1728_v8 = vmul.f32 -1.442695, %v1346_v6  ;;  %v1338_v0 = vadd.f32 %v1718_v30, %v1337_v55 }
 0x20f   : > { %v1904_v57 = vpop.f32.mrf.mxu1 }
 0x210   : > { %1984 = vpow2.f32 %v1728_v8  ;;  %v1726_v10 = vmul.f32 -1.442695, %v1338_v0  ;;  %v1359_v21 = vadd.f32 %v1904_v57, %v1718_v30 }
 0x211   : > { %v1350_v2 = vpop.f32.mrf.mxu1 }
 0x212   : > { %1986 = vpow2.f32 %v1726_v10  ;;  %v1731_v59 = vmul.f32 -1.442695, %v1359_v21  ;;  %v1351_v12 = vadd.f32 %v1718_v30, %v1350_v2 }
 0x213   : > { %v1905_v56 = vpop.f32.mrf.mxu1 }
 0x214   : > { %v1729_v23 = vmul.f32 -1.442695, %v1351_v12  ;;  %v1362_v29 = vadd.f32 %v1905_v56, %v1718_v30  ;;  %1988 = vpow2.f32 %v1731_v59 }
 0x215   : > { %v1353_v42 = vpop.f32.mrf.mxu1 }
 0x216   : > { %1990 = vpow2.f32 %v1729_v23  ;;  %v1732_v58 = vmul.f32 -1.442695, %v1362_v29  ;;  %v1354_v4 = vadd.f32 %v1718_v30, %v1353_v42 }
 0x218   : > { %1992 = vpow2.f32 %v1732_v58  ;;  %v1730_v7 = vmul.f32 -1.442695, %v1354_v4 }
 0x219   : > { %v1981_v34 = vpop.eup %1980 }
 0x21a   : > { %1994 = vpow2.f32 %v1730_v7  ;;  %v1391_v37 = vadd.f32 1.0, %v1981_v34 }
 0x21b   : > { %v1983_v22 = vpop.eup %1982 }
 0x21c   : > { %v1389_v36 = vadd.f32 1.0, %v1983_v22 }
 0x21d   : > { %v1985_v62 = vpop.eup %1984 }
 0x21e   : > { %1996 = vrcp.f32 %v1389_v36  ;;  %v1392_v60 = vadd.f32 1.0, %v1985_v62 }
 0x21f   : > { %v1987_v40 = vpop.eup %1986  ;;  %1998 = vrcp.f32 %v1391_v37 }
 0x220   : > { %v1390_v43 = vadd.f32 1.0, %v1987_v40 }
 0x221   : > { %v1989_v28 = vpop.eup %1988 }
 0x222   : > { %2000 = vrcp.f32 %v1390_v43  ;;  %v1395_v46 = vadd.f32 1.0, %v1989_v28 }
 0x223   : > { %v1991_v41 = vpop.eup %1990  ;;  %2002 = vrcp.f32 %v1392_v60 }
 0x224   : > { %v1393_v44 = vadd.f32 1.0, %v1991_v41 }
 0x225   : > { %v1993_v45 = vpop.eup %1992 }
 0x226   : > { %2004 = vrcp.f32 %v1393_v44  ;;  %v1396_v11 = vadd.f32 1.0, %v1993_v45 }
 0x227   : > { %v1995_v47 = vpop.eup %1994  ;;  %2006 = vrcp.f32 %v1395_v46 }
 0x228   : > { %v1394_v48 = vadd.f32 1.0, %v1995_v47 }
 0x22a   : > { %2008 = vrcp.f32 %v1394_v48 }
 0x22b   : > { %2010 = vrcp.f32 %v1396_v11  ;;  %v1997_v33 = vpop.eup %1996 }
 0x22c   : > { %v1999_v25 = vpop.eup %1998  ;;  %v1413_v49 = vmul.f32 %v1997_v33, %v1335_v39 }
 0x22d   : > { %v1415_v35 = vmul.f32 %v1999_v25, %v1343_v3 }
 0x22f   : > { %v2001_v15 = vpop.eup %2000 }
 0x230   : > { %v1414_v50 = vmul.f32 %v2001_v15, %v1338_v0  ;;  %v2003_v51 = vpop.eup %2002 }
 0x231   : > { %v1416_v31 = vmul.f32 %v2003_v51, %v1346_v6  ;;  %v1733_v6 = vld [vmem:[%s2380_s6] ss:$0 sm:$0xff] }
 0x232   : > { %v1421_v5 = vadd.f32 %v1414_v50, %v1413_v49 }
 0x233   : > { %v2005_v26 = vpop.eup %2004 }
 0x234   : > { %v1422_v32 = vadd.f32 %v1421_v5, %v1415_v35  ;;  %v2007_v52 = vpop.eup %2006  ;;  %v1417_v20 = vmul.f32 %v2005_v26, %v1351_v12 }
 0x235   : > { %v1419_v61 = vmul.f32 %v2007_v52, %v1359_v21 }
 0x236   : > { %v1423_v24 = vadd.f32 %v1422_v32, %v1416_v31 }
 0x237   : > { %v2009_v9 = vpop.eup %2008 }
 0x238   : > { %v1424_v13 = vadd.f32 %v1423_v24, %v1417_v20  ;;  %v1418_v14 = vmul.f32 %v2009_v9, %v1354_v4  ;;  %v2011_v16 = vpop.eup %2010 }
 0x239   : > { %v1420_v63 = vmul.f32 %v2011_v16, %v1362_v29 }
 0x23a   : > { %v1425_v17 = vadd.f32 %v1424_v13, %v1418_v14 }
 0x23c   : > { %v1426_v27 = vadd.f32 %v1425_v17, %v1419_v61 }
 0x23e   : > { %v1427_v18 = vadd.f32 %v1426_v27, %v1420_v63 }
 0x240   : > { %v1428_v30 = vrot.slane %v1427_v18, 4 }
 0x242   : > { %v1429_v1 = vadd.f32 %v1428_v30, %v1427_v18 }
 0x244   : > { %v1430_v3 = vrot.slane %v1429_v1, 2 }
 0x246   : > { %v1431_v38 = vadd.f32 %v1430_v3, %v1429_v1 }
 0x248   : > { %v1432_v19 = vrot.slane %v1431_v38, 1 }
 0x24a   : > { %v1433_v39 = vadd.f32 %v1432_v19, %v1431_v38 }
 0x24c   : > { %v1435_v53 = vmul.f32 0.015625, %v1433_v39 }
 0x24e   : > { %v1436_v54 = vpack.c.bf16 %v1435_v53, %v1435_v53 }
 0x250   : > { %1923 = vmatmul.mubr.bf16.vlgmr.msra.gmra.mxu0 %v1436_v54 }
 0x310   : > { %v1542_v55 = vpop.f32.mrf.mxu0 }
 0x311   : > { %v1543_v8 = vadd.f32 %v1733_v6, %v1542_v55 }
 0x312   : > { %v1924_v0 = vpop.f32.mrf.mxu0 }
 0x313   : > { %1548 = vst [vmem:[%s276_s12] sm:$0xff] %v1543_v8 }
 0x314   : > { %v1545_v57 = vpop.f32.mrf.mxu0 }
 0x316   : > { %v1925_v10 = vpop.f32.mrf.mxu0 }
 0x317 PF: > { %s17_s24 = sadd.s32 1, %s2018_s24  }
 0x318   : > { %p14_p4 = scmp.ge.s32.totalorder %s17_s24, 4  }
 0x31a   :  { %16 = sbr.rel (!%p14_p4) target bundleno = 1 (0x1), region = 91 }

</bundles_post_ra>
